<compile_context>
chip_gen: v5e
topology: v5e:2x2
jax: 0.10.0
libtpu: 0.0.40
codegen_flags: <defaults>
</compile_context>

<pallas_src>
import functools
import math

import jax
import jax.numpy as jnp
from jax.experimental import pallas as pl
from jax.experimental.pallas import tpu as pltpu


def _round_up(x, m):
    return (x + m - 1) // m * m


HEAD_PAD = 8                                 # per-head logits padded to 8 lanes
_VMEM_LIMIT = 32 * 1024 * 1024               # safe on v5e/v6e, headroom on v7x
_HI = jax.lax.Precision.HIGHEST              # true-f32 MXU passes (correctness)


# ------------------------------ Kernel 1: fc ---------------------------------
def _fc_kernel(x_ref, wt_ref, z_ref):
    z_ref[...] = jnp.dot(
        x_ref[...], wt_ref[...],
        preferred_element_type=jnp.float32, precision=_HI,
    ).astype(z_ref.dtype)


def fc_forward(x, wt, tile_n):
    n_pad, in_dim = x.shape
    d_pad = wt.shape[1]
    return pl.pallas_call(
        _fc_kernel,
        out_shape=jax.ShapeDtypeStruct((n_pad, d_pad), x.dtype),
        grid=(n_pad // tile_n,),
        in_specs=[
            # last block dim == full array dim (100) -> legal, no K-padding copy
            pl.BlockSpec((tile_n, in_dim), lambda i: (i, 0)),
            pl.BlockSpec((in_dim, d_pad), lambda i: (0, 0)),    # resident weights
        ],
        out_specs=pl.BlockSpec((tile_n, d_pad), lambda i: (i, 0)),
        compiler_params=pltpu.CompilerParams(
            dimension_semantics=("parallel",),
            vmem_limit_bytes=_VMEM_LIMIT,
        ),
    )(x, wt)


# -------------------- Kernel 2: fused gather + attention ---------------------
def _gat_attn_kernel(nb_ref, z_ref, a_self_ref, a_nb_ref, hexp_ref, o_ref, *,
                     n_real, nb_num, tile_n):
    i = pl.program_id(0)
    row0 = pl.multiple_of(i * tile_n, tile_n)

    z_all = z_ref[...]                           # (N_pad, d_pad) VMEM-resident z
    z_t = z_ref[pl.ds(row0, tile_n), :]          # this tile's own rows (T, d_pad)
    a_self = a_self_ref[...]                     # (d_pad, HEAD_PAD) compact per-head
    a_nb = a_nb_ref[...]                         # (d_pad, HEAD_PAD)
    hexp = hexp_ref[...]                         # (HEAD_PAD, d_pad) 0/1 expander

    # compact per-head self logits (T, HEAD_PAD) -- not broadcast over 128 lanes
    r_self = jnp.dot(z_t, a_self, preferred_element_type=jnp.float32, precision=_HI)

    nb = nb_ref[...]                             # (T, nb_num) int32 neighbour ids
    idx = jnp.where(nb < 0, nb + n_real, nb)     # torch-style negative wrap
    bias = jnp.where(nb == -1, jnp.float32(-1e10), jnp.float32(0.0))

    n_pad, d_pad = z_all.shape
    col_ids = jax.lax.broadcasted_iota(jnp.int32, (tile_n, n_pad), 1)

    # Online softmax over the neighbour axis: only one gathered feature block and
    # one accumulator are live at a time (no unrolled scores[]/feats[] lists).
    m_run = jnp.full((tile_n, HEAD_PAD), -jnp.inf, jnp.float32)
    denom = jnp.zeros((tile_n, HEAD_PAD), jnp.float32)
    acc = jnp.zeros((tile_n, d_pad), jnp.float32)

    for m in range(nb_num):                      # nb_num is small -> static unroll
        sel = (col_ids == idx[:, m:m + 1]).astype(z_all.dtype)   # (T, N_pad) one-hot
        g = jnp.dot(sel, z_all,
                    preferred_element_type=jnp.float32, precision=_HI)  # (T, d_pad)
        # compact per-head neighbour logit (T, HEAD_PAD)
        s = r_self + jnp.dot(g, a_nb, preferred_element_type=jnp.float32,
                             precision=_HI)
        s = jnp.where(s > 0, s, 0.2 * s)         # leaky_relu(negative_slope=0.2)
        s = s + bias[:, m:m + 1]                 # additive -1e10 on padded neighbours

        m_new = jnp.maximum(m_run, s)
        alpha = jnp.exp(m_run - m_new)           # (T, HEAD_PAD) rescale of old state
        e = jnp.exp(s - m_new)
        denom = denom * alpha + e
        # expand per-head scalars onto each head's hdim-lane block (tiny MXU matmuls)
        alpha_l = jnp.dot(alpha, hexp, preferred_element_type=jnp.float32,
                          precision=_HI)
        e_l = jnp.dot(e, hexp, preferred_element_type=jnp.float32, precision=_HI)
        acc = acc * alpha_l + e_l * g
        m_run = m_new

    inv = 1.0 / denom                            # exact normalization (correctness fix)
    inv_l = jnp.dot(inv, hexp, preferred_element_type=jnp.float32, precision=_HI)
    aggre = acc * inv_l
    # ELU(alpha=1); exp(x)-1 differs from expm1 by <= f32 eps (below tolerance)
    o_ref[...] = jnp.where(aggre > 0, aggre, jnp.exp(aggre) - 1.0).astype(o_ref.dtype)


def gat_attention(z, nb, a_self_c, a_nb_c, hexp, n_real, tile_n):
    n_pad, d_pad = z.shape
    nb_num = nb.shape[1]
    kernel = functools.partial(
        _gat_attn_kernel, n_real=n_real, nb_num=nb_num, tile_n=tile_n)
    return pl.pallas_call(
        kernel,
        out_shape=jax.ShapeDtypeStruct((n_pad, d_pad), jnp.float32),
        grid=(n_pad // tile_n,),
        in_specs=[
            pl.BlockSpec((tile_n, nb_num), lambda i: (i, 0)),    # neighbour ids tile
            pl.BlockSpec((n_pad, d_pad), lambda i: (0, 0)),      # full z, resident
            pl.BlockSpec((d_pad, HEAD_PAD), lambda i: (0, 0)),   # compact a_self
            pl.BlockSpec((d_pad, HEAD_PAD), lambda i: (0, 0)),   # compact a_nb
            pl.BlockSpec((HEAD_PAD, d_pad), lambda i: (0, 0)),   # head -> lane expand
        ],
        out_specs=pl.BlockSpec((tile_n, d_pad), lambda i: (i, 0)),   # lane-dense out
        compiler_params=pltpu.CompilerParams(
            dimension_semantics=("parallel",),
            vmem_limit_bytes=_VMEM_LIMIT,
        ),
    )(nb, z, a_self_c, a_nb_c, hexp)


# -------------------------- Parameter preparation ----------------------------
def prepare_gat_params(fc_w, atten_vec, head, hdim, compute_dtype=jnp.float32):
    """One-time (outside the hot path): W transposed/lane-padded, compact per-head
    attention vectors (d_pad, HEAD_PAD), and the 0/1 head->lane expansion matrix."""
    out_dim, in_dim = fc_w.shape
    d = head * hdim
    assert out_dim == d
    d_pad = _round_up(d, 128)

    wt = jnp.zeros((in_dim, d_pad), jnp.float32)
    wt = wt.at[:, :d].set(jnp.asarray(fc_w, jnp.float32).T).astype(compute_dtype)

    av = jnp.asarray(atten_vec, jnp.float32).reshape(head, 2 * hdim)
    a_self_flat = jnp.zeros((d_pad,), jnp.float32).at[:d].set(av[:, :hdim].reshape(d))
    a_nb_flat = jnp.zeros((d_pad,), jnp.float32).at[:d].set(av[:, hdim:].reshape(d))

    lane = jnp.arange(d_pad)
    hid = jnp.arange(HEAD_PAD)
    member = ((lane[:, None] // hdim) == hid[None, :]) \
        & (lane[:, None] < d) & (hid[None, :] < head)          # (d_pad, HEAD_PAD)
    a_self_c = jnp.where(member, a_self_flat[:, None], 0.0)
    a_nb_c = jnp.where(member, a_nb_flat[:, None], 0.0)
    hexp = member.T.astype(jnp.float32)                        # (HEAD_PAD, d_pad)

    return dict(wt=wt, a_self_c=a_self_c, a_nb_c=a_nb_c, hexp=hexp,
                d=d, d_pad=d_pad, compute_dtype=compute_dtype)


# ------------------------------ Full forward ---------------------------------
def gat_layer_forward(feature, nb_id, prep, head, hdim, tile_attn=128, tile_fc=512):
    n, in_dim = feature.shape
    d, d_pad = prep["d"], prep["d_pad"]
    cdt = prep["compute_dtype"]

    # decoupled tiles: fc is mem-bound (bigger tile), attention tile sized for vregs;
    # fc tile is a multiple of the attention tile so one row padding serves both grids.
    t_a = min(_round_up(tile_attn, 8), _round_up(n, 8))
    t_f = min(_round_up(tile_fc, t_a), _round_up(n, t_a))
    n_pad = _round_up(n, t_f)

    x = jnp.asarray(feature, cdt)
    nb2 = jnp.asarray(nb_id, jnp.int32).reshape(n, -1)
    if n_pad != n:
        # TODO(synk): for very large n, fold this row padding into a partial last
        #             grid block instead of an extra HBM round-trip of X.
        x = jnp.pad(x, ((0, n_pad - n), (0, 0)))
        nb2 = jnp.pad(nb2, ((0, n_pad - n), (0, 0)))

    z = fc_forward(x, prep["wt"], t_f)                               # (n_pad, d_pad)
    out = gat_attention(z, nb2, prep["a_self_c"], prep["a_nb_c"],
                        prep["hexp"], n, t_a)                        # (n_pad, d_pad)
    # TODO(synk): nn.Dropout(p=0.5) is stochastic training-time; identity here (eval).
    return out[:n, :d]


# ---------------------------- Pure-JAX reference -----------------------------
def gat_layer_ref(feature, nb_id, fc_w, atten_vec, head, hdim):
    n = feature.shape[0]
    z = jnp.dot(feature, fc_w.T, precision=_HI)
    nb = nb_id.reshape(n, -1)
    nb_num = nb.shape[1]
    idx = jnp.where(nb < 0, nb + n, nb).reshape(-1)
    neighbors = z[idx].reshape(n, nb_num, head, hdim)
    z4 = jnp.broadcast_to(z.reshape(n, 1, head, hdim), (n, nb_num, head, hdim))
    cat = jnp.concatenate([z4, neighbors], axis=-1)
    a = atten_vec.reshape(head, 2 * hdim, 1)
    score = jnp.einsum("hds,nmhd->nmhs", a, cat, precision=_HI)
    score = jnp.where(score > 0, score, 0.2 * score)
    mask = (nb == -1)[:, :, None, None]
    score = jnp.where(mask, -1e10, score)
    score = jax.nn.softmax(score, axis=1)
    aggre = jnp.sum(score * neighbors, axis=1).reshape(n, -1)
    return jnp.where(aggre > 0, aggre, jnp.expm1(aggre))


if __name__ == "__main__":
    # module defaults: in_dim=100, out_head=5, hdim=25 -> fc present (100 != 125)
    in_dim, head, hdim = 100, 5, 25
    n, nb_num = 16, 4

    key = jax.random.PRNGKey(0)
    k1, k2, k3, k4 = jax.random.split(key, 4)
    feature = jax.random.normal(k1, (n, in_dim), dtype=jnp.float32)
    fc_w = jax.random.normal(k2, (head * hdim, in_dim), dtype=jnp.float32) / math.sqrt(in_dim)
    atten_vec = jax.random.normal(k3, (head * hdim * 2, 1), dtype=jnp.float32)
    nb_id = jax.random.randint(k4, (n, nb_num), 0, n, dtype=jnp.int32)
    nb_id = nb_id.at[0, 3].set(-1).at[5, 1].set(-1)   # some padded neighbours

    prep = prepare_gat_params(fc_w, atten_vec, head, hdim)   # one-time param prep
    # small tiles so the toy case exercises real multi-step grids
    out = gat_layer_forward(feature, nb_id, prep, head, hdim, tile_attn=8, tile_fc=16)
    out = jax.block_until_ready(out)

    ref = gat_layer_ref(feature, nb_id, fc_w, atten_vec, head, hdim)
    assert out.shape == (n, head * hdim)
    err = float(jnp.max(jnp.abs(out - ref)))
    assert bool(jnp.allclose(out, ref, atol=2e-3, rtol=2e-3)), err
    print("KERNEL_OK")
</pallas_src>

<mosaic_0001>
module attributes {stable_mosaic.version = 11 : i64} {
  func.func @_fc_kernel(%arg0: i32, %arg1: memref<16x100xf32, #tpu.memory_space<vmem>>, %arg2: memref<100x128xf32, #tpu.memory_space<vmem>>, %arg3: memref<16x128xf32, #tpu.memory_space<vmem>>) attributes {dimension_semantics = [#tpu.dimension_semantics<parallel>], iteration_bounds = array<i64: 1>, scalar_prefetch = 0 : i64, scratch_operands = 0 : i64, tpu.core_type = #tpu.core_type<tc>, window_params = [{transform_indices = @transform_0, window_bounds = array<i64: 16, 100>}, {pipeline_mode = #tpu.pipeline_mode<synchronous>, transform_indices = @transform_1, window_bounds = array<i64: 100, 128>}, {transform_indices = @transform_2, window_bounds = array<i64: 16, 128>}]} {
    %c0 = arith.constant 0 : index
    %c0_0 = arith.constant 0 : index
    %0 = vector.load %arg1[%c0, %c0_0] : memref<16x100xf32, #tpu.memory_space<vmem>>, vector<16x100xf32>
    %c0_1 = arith.constant 0 : index
    %c0_2 = arith.constant 0 : index
    %1 = vector.load %arg2[%c0_1, %c0_2] : memref<100x128xf32, #tpu.memory_space<vmem>>, vector<100x128xf32>
    %cst = arith.constant dense<0.000000e+00> : vector<16x128xf32>
    %2 = tpu.matmul %0, %1, %cst {dimension_numbers = #tpu.dot_dimension_numbers<[1], [0], [0], [1], [0, 0, 1, 1], [], []>, precision = #tpu.contract_precision<fp32>} : vector<16x100xf32>, vector<100x128xf32>, vector<16x128xf32> -> vector<16x128xf32>
    %c0_3 = arith.constant 0 : index
    %c0_4 = arith.constant 0 : index
    %3 = vector.load %arg3[%c0_3, %c0_4] : memref<16x128xf32, #tpu.memory_space<vmem>>, vector<16x128xf32>
    tpu.vector_store %arg3[%c0_3, %c0_4], %2 {strides = array<i32>} : memref<16x128xf32, #tpu.memory_space<vmem>>, vector<16x128xf32>,
    return
  }
  func.func @transform_0(%arg0: i32) -> (i32, i32) {
    %c0_i32 = arith.constant 0 : i32
    %c0_i32_0 = arith.constant 0 : i32
    return %arg0, %c0_i32 : i32, i32
  }
  func.func @transform_1(%arg0: i32) -> (i32, i32) {
    %c0_i32 = arith.constant 0 : i32
    %c0_i32_0 = arith.constant 0 : i32
    %c0_i32_1 = arith.constant 0 : i32
    return %c0_i32, %c0_i32_0 : i32, i32
  }
  func.func @transform_2(%arg0: i32) -> (i32, i32) {
    %c0_i32 = arith.constant 0 : i32
    %c0_i32_0 = arith.constant 0 : i32
    return %arg0, %c0_i32 : i32, i32
  }
}

</mosaic_0001>

<bundles_post_ra>
// kernel: tpu_custom_call.1
= control target key start
LH: loop header
LB: loop body
LE: loop exit
PB: predicated region body
PF: predicated region fallthrough
CT: control target
= control target key end

     0   :  { %7 = vsyncpa [#allocation3], 0  ;;  %s742_s0 = inlined_call_operand.hbm [shape: f32[16,100], index: 0, kind: input, shape index: {}]   ;;  %s743_s1 = inlined_call_operand.hbm [shape: f32[100,128], index: 1, kind: input, shape index: {}]   ;;  %s744_s2 = inlined_call_operand.hbm [shape: f32[16,128], index: 2, kind: output, shape index: {}]  }
   0x1   :  { %8 = vsyncpa [#allocation6], 0 }
   0x2   :  { %9 = vsyncpa [#allocation4], 0  ;;  %s14_s11 = sshll.u32 %s742_s0, 4  ;;  %s534_s12 = smov [#allocation2]   ;;  %s15_s11 = int_to_ptr.hbm [resolvable:$true] %s14_s11 }
   0x3   :  { %s16_s13 = sshll.u32 %s534_s12, 4  ;;  %s27_s16 = sshll.u32 %s743_s1, 4  ;;  %s17_s13 = int_to_ptr.vmem [resolvable:$true] %s16_s13  ;;  %s28_s16 = int_to_ptr.hbm [resolvable:$true] %s27_s16 }
   0x4   :  { %s535_s17 = smov 128   ;;  %s536_s18 = smov 8  }
   0x5   :  { %22 = dma.hbm_to_vmem [thread:$0]  %s15_s11, 256, %s17_s13, [#allocation3], %s535_s17, %s535_s17, %s536_s18  }
   0x6   :  { %s537_s19 = smov [#allocation5]  }
   0x7   :  { %s29_s20 = sshll.u32 %s537_s19, 4  ;;  %s30_s20 = int_to_ptr.vmem [resolvable:$true] %s29_s20 }
   0x8   :  { %35 = dma.hbm_to_vmem [thread:$0]  %s28_s16, 1664, %s30_s20, [#allocation6], %s535_s17, %s535_s17, %s536_s18  }
   0x9   :  { %528 = dma.done.wait [#allocation3], 256  }
   0xa   :  { %529 = vsyncadd [#allocation3], 4294967040 }
   0xb   :  { %530 = dma.done.wait [#allocation6], 1664  }
   0xc   :  { %531 = vsyncadd [#allocation6], 4294965632  ;;  %vm66_vm0 = vcmask 1043456   ;;  %v58_v0 = vld [vmem:[#allocation5 + $0x60] sm:$0xf]  ;;  %v57_v1 = vld [vmem:[#allocation5 + $0x58] sm:$0xff] }
   0xd   :  { %v56_v2 = vld [vmem:[#allocation5 + $0x50] sm:$0xff]  ;;  %v68_v3 = vsel %vm66_vm0, %v58_v0, 0  ;;  %v566_v4 = vand.u32 4294901760, %v57_v1  ;;  %v55_v6 = vld [vmem:[#allocation5 + $0x48] sm:$0xff]  ;;  %v54_v7 = vld [vmem:[#allocation5 + $0x40] sm:$0xff]  ;;  %vm59_vm1 = vcmask 818176  }
   0xe   :  { %v568_v5 = vand.u32 4294901760, %v56_v2  ;;  %v53_v8 = vld [vmem:[#allocation5 + $0x38] sm:$0xff]  ;;  %v570_v9 = vand.u32 4294901760, %v68_v3  ;;  %v572_v10 = vand.u32 4294901760, %v55_v6  ;;  %v574_v11 = vand.u32 4294901760, %v54_v7  ;;  %v52_v13 = vld [vmem:[#allocation5 + $0x30] sm:$0xff] }
   0xf   :  { %v576_v12 = vand.u32 4294901760, %v53_v8  ;;  %v51_v14 = vld [vmem:[#allocation5 + $0x28] sm:$0xff]  ;;  %v126_v15 = vsub.f32 %v57_v1, %v566_v4  ;;  %v580_v17 = vand.u32 4294901760, %v52_v13  ;;  %v50_v25 = vld [vmem:[#allocation5 + $0x20] sm:$0xff]  ;;  %v49_v31 = vld [vmem:[#allocation5 + $0x18] sm:$0xff]  ;;  %s538_s0 = smov [#allocation7]  }
  0x10   :  { %v132_v16 = vsub.f32 %v56_v2, %v568_v5  ;;  %74 = vmatpush.msra.mxu0 %v570_v9  ;;  %v120_v18 = vsub.f32 %v68_v3, %v570_v9  ;;  %263 = vmatpush.msra.mxu3 %v570_v9  ;;  %v138_v19 = vsub.f32 %v55_v6, %v572_v10  ;;  %v592_v24 = vand.u32 4294901760, %v51_v14  ;;  %v48_v37 = vld [vmem:[#allocation5 + $0x10] sm:$0xff]  ;;  %v47_v44 = vld [vmem:[#allocation5 + $0x8] sm:$0xff]  ;;  %v46_v49 = vld [vmem:[#allocation5] sm:$0xff]  ;;  %s409_s1 = sshll.u32 %s538_s0, 4  ;;  %s411_s23 = sshll.u32 %s744_s2, 4  ;;  %s410_s1 = int_to_ptr.vmem [resolvable:$true] %s409_s1  ;;  %s412_s23 = int_to_ptr.hbm [resolvable:$true] %s411_s23 }
  0x11   :  { %v144_v20 = vsub.f32 %v54_v7, %v574_v11  ;;  %v587_v21 = vand.u32 4294901760, %v126_v15  ;;  %v150_v23 = vsub.f32 %v53_v8, %v576_v12  ;;  %v156_v29 = vsub.f32 %v52_v13, %v580_v17  ;;  %v44_v50 = vld [vmem:[#allocation2] sm:$0xff] }
  0x12   :  { %v589_v22 = vand.u32 4294901760, %v132_v16  ;;  %76 = vmatpush.msra.mxu0 %v566_v4  ;;  %211 = vmatpush.msra.mxu2 %v120_v18  ;;  %v595_v26 = vand.u32 4294901760, %v120_v18  ;;  %v597_v27 = vand.u32 4294901760, %v138_v19  ;;  %v607_v34 = vand.u32 4294901760, %v50_v25 }
  0x13   :  { %265 = vmatpush.msra.mxu3 %v566_v4  ;;  %v128_v28 = vsub.f32 %v126_v15, %v587_v21  ;;  %v602_v30 = vand.u32 4294901760, %v144_v20  ;;  %v162_v35 = vsub.f32 %v51_v14, %v592_v24  ;;  %v611_v36 = vand.u32 4294901760, %v150_v23 }
  0x14   :  { %78 = vmatpush.msra.mxu0 %v568_v5  ;;  %214 = vmatpush.msra.mxu2 %v126_v15  ;;  %v122_v32 = vsub.f32 %v120_v18, %v595_v26  ;;  %v134_v33 = vsub.f32 %v132_v16, %v589_v22  ;;  %v140_v40 = vsub.f32 %v138_v19, %v597_v27  ;;  %v615_v41 = vand.u32 4294901760, %v49_v31 }
  0x15   :  { %267 = vmatpush.msra.mxu3 %v568_v5  ;;  %v129_v39 = vand.u32 4294901760, %v128_v28  ;;  %v146_v42 = vsub.f32 %v144_v20, %v602_v30  ;;  %v619_v43 = vand.u32 4294901760, %v156_v29  ;;  %v168_v46 = vsub.f32 %v50_v25, %v607_v34 }
  0x16   :  { %80 = vmatpush.msra.mxu0 %v572_v10  ;;  %217 = vmatpush.msra.mxu2 %v132_v16  ;;  %v123_v38 = vand.u32 4294901760, %v122_v32  ;;  %v135_v45 = vand.u32 4294901760, %v134_v33  ;;  %v623_v47 = vand.u32 4294901760, %v48_v37  ;;  %v152_v48 = vsub.f32 %v150_v23, %v611_v36  ;;  %v45_v16 = vld [vmem:[#allocation2 + $0x8] sm:$0xff] }
  0x17   :  { %269 = vmatpush.msra.mxu3 %v572_v10  ;;  %v141_v51 = vand.u32 4294901760, %v140_v40  ;;  %v174_v52 = vsub.f32 %v49_v31, %v615_v41  ;;  %v629_v53 = vand.u32 4294901760, %v47_v44  ;;  %v631_v54 = vand.u32 4294901760, %v162_v35 }
  0x18   :  { %82 = vmatpush.msra.mxu0 %v574_v11  ;;  %124 = vmatpush.msra.mxu1 %v123_v38  ;;  %v147_v55 = vand.u32 4294901760, %v146_v42  ;;  %v158_v56 = vsub.f32 %v156_v29, %v619_v43  ;;  %v180_v57 = vsub.f32 %v48_v37, %v623_v47  ;;  %v637_v58 = vand.u32 4294901760, %v46_v49 }
  0x19   :  { %220 = vmatpush.msra.mxu2 %v138_v19  ;;  %271 = vmatpush.msra.mxu3 %v574_v11  ;;  %v639_v59 = vand.u32 4294901760, %v168_v46  ;;  %v61_v60 = vsel %vm59_vm1, %v44_v50, 0  ;;  %v153_v61 = vand.u32 4294901760, %v152_v48  ;;  %v164_v62 = vsub.f32 %v162_v35, %v631_v54 }
  0x1a   :  { %84 = vmatpush.msra.mxu0 %v576_v12  ;;  %130 = vmatpush.msra.mxu1 %v129_v39  ;;  %v186_v63 = vsub.f32 %v47_v44, %v629_v53  ;;  %v646_v0 = vand.u32 4294901760, %v174_v52  ;;  %v649_v1 = vand.u32 4294901760, %v61_v60  ;;  %v159_v2 = vand.u32 4294901760, %v158_v56 }
  0x1b   :  { %223 = vmatpush.msra.mxu2 %v144_v20  ;;  %273 = vmatpush.msra.mxu3 %v576_v12  ;;  %v170_v3 = vsub.f32 %v168_v46, %v639_v59  ;;  %v192_v6 = vsub.f32 %v46_v49, %v637_v58  ;;  %v654_v7 = vand.u32 4294901760, %v180_v57  ;;  %v165_v8 = vand.u32 4294901760, %v164_v62 }
  0x1c   :  { %86 = vmatpush.msra.mxu0 %v580_v17  ;;  %136 = vmatpush.msra.mxu1 %v135_v45  ;;  %v176_v13 = vsub.f32 %v174_v52, %v646_v0  ;;  %v659_v14 = vand.u32 4294901760, %v186_v63  ;;  %v100_v15 = vsub.f32 %v61_v60, %v649_v1  ;;  %v64_v28 = vsel %vm59_vm1, %v45_v16, 0 }
  0x1d   :  { %226 = vmatpush.msra.mxu2 %v150_v23  ;;  %275 = vmatpush.msra.mxu3 %v580_v17  ;;  %v171_v18 = vand.u32 4294901760, %v170_v3  ;;  %v182_v19 = vsub.f32 %v180_v57, %v654_v7  ;;  %v665_v20 = vand.u32 4294901760, %v192_v6  ;;  %v675_v33 = vand.u32 4294901760, %v64_v28 }
  0x1e   :  { %88 = vmatpush.msra.mxu0 %v592_v24  ;;  %142 = vmatpush.msra.mxu1 %v141_v51  ;;  %v177_v23 = vand.u32 4294901760, %v176_v13  ;;  %v188_v25 = vsub.f32 %v186_v63, %v659_v14 }
  0x1f   :  { %229 = vmatpush.msra.mxu2 %v156_v29  ;;  %277 = vmatpush.msra.mxu3 %v592_v24  ;;  %v101_v29 = vand.u32 4294901760, %v100_v15  ;;  %v183_v31 = vand.u32 4294901760, %v182_v19  ;;  %v194_v32 = vsub.f32 %v192_v6, %v665_v20  ;;  %v108_v39 = vsub.f32 %v64_v28, %v675_v33 }
  0x20   :  { %90 = vmatpush.msra.mxu0 %v607_v34  ;;  %148 = vmatpush.msra.mxu1 %v147_v55 }
  0x21   :  { %232 = vmatpush.msra.mxu2 %v162_v35  ;;  %279 = vmatpush.msra.mxu3 %v607_v34  ;;  %v189_v35 = vand.u32 4294901760, %v188_v25  ;;  %v102_v37 = vsub.f32 %v100_v15, %v101_v29  ;;  %v195_v38 = vand.u32 4294901760, %v194_v32 }
  0x22   :  { %92 = vmatpush.msra.mxu0 %v615_v41  ;;  %154 = vmatpush.msra.mxu1 %v153_v61 }
  0x23   :  { %235 = vmatpush.msra.mxu2 %v168_v46  ;;  %281 = vmatpush.msra.mxu3 %v615_v41  ;;  %v103_v40 = vand.u32 4294901760, %v102_v37 }
  0x24   :  { %94 = vmatpush.msra.mxu0 %v623_v47  ;;  %160 = vmatpush.msra.mxu1 %v159_v2 }
  0x25   :  { %238 = vmatpush.msra.mxu2 %v174_v52  ;;  %283 = vmatpush.msra.mxu3 %v623_v47 }
  0x26   :  { %96 = vmatpush.msra.mxu0 %v629_v53  ;;  %166 = vmatpush.msra.mxu1 %v165_v8 }
  0x27   :  { %241 = vmatpush.msra.mxu2 %v180_v57  ;;  %285 = vmatpush.msra.mxu3 %v629_v53 }
  0x28   :  { %98 = vmatpush.msra.mxu0 %v637_v58  ;;  %172 = vmatpush.msra.mxu1 %v171_v18 }
  0x29   :  { %244 = vmatpush.msra.mxu2 %v186_v63  ;;  %287 = vmatpush.msra.mxu3 %v637_v58 }
  0x2a   :  { %307 = vmatpush.msrb.mxu0 %v595_v26  ;;  %178 = vmatpush.msra.mxu1 %v177_v23 }
  0x2b   :  { %247 = vmatpush.msra.mxu2 %v192_v6  ;;  %438 = vmatpush.msrb.mxu3 %v570_v9 }
  0x2c   :  { %311 = vmatpush.msrb.mxu0 %v587_v21  ;;  %184 = vmatpush.msra.mxu1 %v183_v31 }
  0x2d   :  { %425 = vmatpush.msrb.mxu2 %v595_v26  ;;  %439 = vmatpush.msrb.mxu3 %v566_v4  ;;  %v109_v26 = vand.u32 4294901760, %v108_v39 }
  0x2e   :  { %315 = vmatpush.msrb.mxu0 %v589_v22  ;;  %190 = vmatpush.msra.mxu1 %v189_v35 }
  0x2f   :  { %426 = vmatpush.msrb.mxu2 %v587_v21  ;;  %440 = vmatpush.msrb.mxu3 %v568_v5  ;;  %v110_v21 = vsub.f32 %v108_v39, %v109_v26 }
  0x30   :  { %319 = vmatpush.msrb.mxu0 %v597_v27  ;;  %196 = vmatpush.msra.mxu1 %v195_v38 }
  0x31   :  { %427 = vmatpush.msrb.mxu2 %v589_v22  ;;  %104 = vmatmul.f32.vlgmr.msra.gmra.mxu0 %v103_v40 }
  0x32   :  { %323 = vmatpush.msrb.mxu0 %v602_v30  ;;  %369 = vmatpush.msrb.mxu1 %v570_v9 }
  0x33   :  { %428 = vmatpush.msrb.mxu2 %v597_v27  ;;  %441 = vmatpush.msrb.mxu3 %v572_v10 }
  0x34   :  { %371 = vmatpush.msrb.mxu1 %v566_v4  ;;  %327 = vmatpush.msrb.mxu0 %v611_v36  ;;  %v111_v4 = vand.u32 4294901760, %v110_v21 }
  0x35   :  { %429 = vmatpush.msrb.mxu2 %v602_v30  ;;  %442 = vmatpush.msrb.mxu3 %v574_v11 }
  0x36   :  { %250 = vmatmul.f32.vlgmr.msra.gmra.mxu2 %v100_v15  ;;  %331 = vmatpush.msrb.mxu0 %v619_v43 }
  0x37   :  { %430 = vmatpush.msrb.mxu2 %v611_v36  ;;  %373 = vmatpush.msrb.mxu1 %v568_v5 }
  0x38   :  { %291 = vmatmul.f32.vlgmr.msra.gmra.mxu3 %v101_v29  ;;  %335 = vmatpush.msrb.mxu0 %v631_v54 }
  0x39   :  { %431 = vmatpush.msrb.mxu2 %v619_v43  ;;  %375 = vmatpush.msrb.mxu1 %v572_v10 }
  0x3a   :  { %443 = vmatpush.msrb.mxu3 %v576_v12  ;;  %198 = vmatmul.f32.vlgmr.msra.gmra.mxu1 %v649_v1 }
  0x3b   :  { %432 = vmatpush.msrb.mxu2 %v631_v54  ;;  %339 = vmatpush.msrb.mxu0 %v639_v59 }
  0x3c   :  { %377 = vmatpush.msrb.mxu1 %v574_v11  ;;  %444 = vmatpush.msrb.mxu3 %v580_v17 }
  0x3d   :  { %112 = vmatmul.f32.gmra.mxu0 %v111_v4  ;;  %433 = vmatpush.msrb.mxu2 %v639_v59 }
  0x3e   :  { %343 = vmatpush.msrb.mxu0 %v646_v0  ;;  %379 = vmatpush.msrb.mxu1 %v576_v12 }
  0x3f   :  { %445 = vmatpush.msrb.mxu3 %v592_v24  ;;  %255 = vmatmul.f32.gmra.mxu2 %v108_v39 }
  0x40   :  { %434 = vmatpush.msrb.mxu2 %v646_v0  ;;  %347 = vmatpush.msrb.mxu0 %v654_v7 }
  0x41   :  { %381 = vmatpush.msrb.mxu1 %v580_v17  ;;  %446 = vmatpush.msrb.mxu3 %v607_v34 }
  0x42   :  { %297 = vmatmul.f32.gmra.mxu3 %v109_v26  ;;  %435 = vmatpush.msrb.mxu2 %v654_v7 }
  0x43   :  { %351 = vmatpush.msrb.mxu0 %v659_v14  ;;  %383 = vmatpush.msrb.mxu1 %v592_v24 }
  0x44   :  { %447 = vmatpush.msrb.mxu3 %v615_v41  ;;  %202 = vmatmul.f32.gmra.mxu1 %v675_v33 }
  0x45   :  { %436 = vmatpush.msrb.mxu2 %v659_v14  ;;  %355 = vmatpush.msrb.mxu0 %v665_v20 }
  0x46   :  { %385 = vmatpush.msrb.mxu1 %v607_v34  ;;  %448 = vmatpush.msrb.mxu3 %v623_v47 }
  0x47   :  { %357 = vmatmul.f32.vlgmr.msrb.gmra.mxu0 %v649_v1  ;;  %437 = vmatpush.msrb.mxu2 %v665_v20 }
  0x48   :  { %387 = vmatpush.msrb.mxu1 %v615_v41  ;;  %449 = vmatpush.msrb.mxu3 %v629_v53 }
  0x49   :  { %361 = vmatmul.f32.vlgmr.msrb.gmra.mxu2 %v675_v33 }
  0x4a   :  { %389 = vmatpush.msrb.mxu1 %v623_v47  ;;  %450 = vmatpush.msrb.mxu3 %v637_v58 }
  0x4b   :  { %399 = vmatmul.f32.vlgmr.msrb.gmra.mxu3 %v675_v33 }
  0x4c   :  { %391 = vmatpush.msrb.mxu1 %v629_v53 }
  0x4e   :  { %393 = vmatpush.msrb.mxu1 %v637_v58 }
  0x4f   :  { %395 = vmatmul.f32.vlgmr.msrb.gmra.mxu1 %v649_v1 }
  0xae   :  { %v105_v5 = vpop.f32.mrf.mxu0 }
  0xb7   :  { %v199_v9 = vpop.f32.mrf.mxu1 }
  0xb8   :  { %v200_v17 = vadd.f32 %v199_v9, %v105_v5 }
  0xb9   :  { %v251_v10 = vpop.f32.mrf.mxu2 }
  0xba   :  { %v113_v12 = vpop.f32.mrf.mxu0  ;;  %v252_v30 = vadd.f32 %v251_v10, %v200_v17 }
  0xbb   :  { %v292_v11 = vpop.f32.mrf.mxu3 }
  0xbc   :  { %v293_v42 = vadd.f32 %v292_v11, %v252_v30 }
  0xc1   :  { %v203_v22 = vpop.f32.mrf.mxu1 }
  0xc2   :  { %v256_v24 = vpop.f32.mrf.mxu2  ;;  %v204_v27 = vadd.f32 %v203_v22, %v113_v12 }
  0xc4   :  { %v257_v36 = vadd.f32 %v256_v24, %v204_v27  ;;  %v358_v41 = vpop.f32.mrf.mxu0 }
  0xc5   :  { %v298_v34 = vpop.f32.mrf.mxu3  ;;  %v359_v43 = vadd.f32 %v358_v41, %v293_v42 }
  0xc6   :  { %v299_v44 = vadd.f32 %v298_v34, %v257_v36 }
  0xcc   :  { %v362_v45 = vpop.f32.mrf.mxu2  ;;  %v396_v46 = vpop.f32.mrf.mxu1 }
  0xcd   :  { %v363_v47 = vadd.f32 %v362_v45, %v299_v44  ;;  %v397_v48 = vadd.f32 %v396_v46, %v359_v43 }
  0xce   :  { %v400_v49 = vpop.f32.mrf.mxu3 }
  0xcf   :  { %403 = vst [vmem:[#allocation7] sm:$0xff] %v397_v48  ;;  %v401_v50 = vadd.f32 %v400_v49, %v363_v47 }
  0xd1   :  { %404 = vst [vmem:[#allocation7 + $0x8] sm:$0xff] %v401_v50 }
  0xd2   :  { %417 = dma.vmem_to_hbm [thread:$0]  %s410_s1, 256, %s412_s23, [#allocation4], %s535_s17, %s535_s17, %s536_s18  }
  0xd3   :  { %532 = dma.done.wait [#allocation4], 256  }
  0xd4   :  { %533 = vsyncadd [#allocation4], 4294967040 }
  0xd5   :  { %422 = vsyncpa [#allocation3], 1 }
  0xd6   :  { %423 = vsyncpa [#allocation6], 1 }
  0xd7   :  { %424 = vsyncpa [#allocation4], 1 }

</bundles_post_ra>
